<compile_context>
chip_gen: v5e
topology: v5e:2x2
jax: 0.10.0
libtpu: 0.0.40
codegen_flags: <defaults>
</compile_context>

<pallas_src>
import functools

import jax
import jax.numpy as jnp
from jax.experimental import pallas as pl
from jax.experimental.pallas import tpu as pltpu

_LANE = 128
_SUBLANE = 8


def _round_up(n, m):
    return (n + m - 1) // m * m


def _predict_kernel(x_ref, w1_ref, b1_ref, ln_c_ref,
                    w2_ref, b2_ref, w3_ref, b3_ref,
                    o_ref, *, hidden_dim, eps):
    # bf16 inputs to the MXU, f32 accumulation everywhere.
    x = x_ref[...]                                               # (tb, num_inputs) bf16

    # ---- linear1 ----
    h1 = (jnp.dot(x, w1_ref[...], preferred_element_type=jnp.float32)
          + b1_ref[...])                                         # (tb, hidden) f32

    # ---- LayerNorm (center=True, scale=False), torch.std (ddof=1), eps on std ----
    mean = jnp.mean(h1, axis=-1, keepdims=True)
    diff = h1 - mean
    var = jnp.sum(diff * diff, axis=-1, keepdims=True) * (1.0 / (hidden_dim - 1))
    std = jnp.sqrt(var)
    inv = pl.reciprocal(std + eps, approx=True)                  # EUP slot (~free)
    h = jnp.maximum(diff * inv + ln_c_ref[...], 0.0)             # + center_param, relu

    # ---- linear2 + relu ----
    h2 = (jnp.dot(h.astype(jnp.bfloat16), w2_ref[...],
                  preferred_element_type=jnp.float32) + b2_ref[...])
    h2 = jnp.maximum(h2, 0.0)

    # ---- last_fc (output columns zero-padded to a lane-dense width) ----
    out = (jnp.dot(h2.astype(jnp.bfloat16), w3_ref[...],
                   preferred_element_type=jnp.float32) + b3_ref[...])
    o_ref[...] = out.astype(o_ref.dtype)


def predict_action_forward(x, params, *, eps=1e-6, max_tb=512):
    """Fused forward pass in a single Pallas kernel, tiled over batch."""
    B, num_inputs = x.shape
    w1 = params["w1"]; b1 = params["b1"]; ln_c = params["ln_center"]
    w2 = params["w2"]; b2 = params["b2"]
    w3 = params["w3"]; b3 = params["b3"]
    hidden_dim = w1.shape[1]
    num_outputs = w3.shape[1]
    assert hidden_dim > 1, "LayerNorm with torch.std (ddof=1) needs hidden_dim > 1"

    # --- batch tiling: whole padded batch if small, else 512-row MXU-sized tiles ---
    B8 = _round_up(B, _SUBLANE)
    tb = B8 if B8 <= max_tb else max_tb
    B_pad = _round_up(B8, tb)

    # --- lane-dense output: pad num_outputs to a multiple of 128 with zeros ---
    n_out_pad = _round_up(num_outputs, _LANE)

    # bf16 weights/activations (f32 accumulation in-kernel); biases / LN center f32.
    x_p = jnp.zeros((B_pad, num_inputs), jnp.bfloat16).at[:B].set(
        x.astype(jnp.bfloat16))
    w1_b = w1.astype(jnp.bfloat16)
    w2_b = w2.astype(jnp.bfloat16)
    w3_b = jnp.zeros((hidden_dim, n_out_pad), jnp.bfloat16).at[:, :num_outputs].set(
        w3.astype(jnp.bfloat16))
    b1_2d = b1.reshape(1, hidden_dim).astype(jnp.float32)
    b2_2d = b2.reshape(1, hidden_dim).astype(jnp.float32)
    ln_2d = ln_c.reshape(1, hidden_dim).astype(jnp.float32)
    b3_2d = jnp.zeros((1, n_out_pad), jnp.float32).at[:, :num_outputs].set(
        b3.reshape(1, num_outputs).astype(jnp.float32))

    def full_spec(arr):
        # Whole-array block, same tile every grid step.
        return pl.BlockSpec(arr.shape, lambda i: (0,) * arr.ndim)

    grid = (B_pad // tb,)
    kernel = functools.partial(_predict_kernel, hidden_dim=hidden_dim, eps=eps)

    out = pl.pallas_call(
        kernel,
        out_shape=jax.ShapeDtypeStruct((B_pad, n_out_pad), jnp.float32),
        grid_spec=pltpu.PrefetchScalarGridSpec(
            num_scalar_prefetch=0,
            grid=grid,
            in_specs=[
                pl.BlockSpec((tb, num_inputs), lambda i: (i, 0)),   # x tile
                full_spec(w1_b), full_spec(b1_2d), full_spec(ln_2d),
                full_spec(w2_b), full_spec(b2_2d),
                full_spec(w3_b), full_spec(b3_2d),
            ],
            out_specs=pl.BlockSpec((tb, n_out_pad), lambda i: (i, 0)),
        ),
        compiler_params=pltpu.CompilerParams(
            dimension_semantics=("parallel",)),
    )(x_p, w1_b, b1_2d, ln_2d, w2_b, b2_2d, w3_b, b3_2d)

    return out[:B, :num_outputs]


def init_params(key, num_inputs, hidden_dim, num_outputs):
    """Xavier-uniform weights (gain=1), zero biases — mirrors weights_init_.

    Weights stored as [in_features, out_features] (transposed vs torch) so the
    kernel does plain x @ W + b.
    """
    def xavier(k, fan_in, fan_out):
        limit = jnp.sqrt(6.0 / (fan_in + fan_out))
        return jax.random.uniform(k, (fan_in, fan_out), jnp.float32, -limit, limit)

    k1, k2, k3 = jax.random.split(key, 3)
    return {
        "w1": xavier(k1, num_inputs, hidden_dim),
        "b1": jnp.zeros((hidden_dim,), jnp.float32),
        "ln_center": jnp.zeros((hidden_dim,), jnp.float32),
        "w2": xavier(k2, hidden_dim, hidden_dim),
        "b2": jnp.zeros((hidden_dim,), jnp.float32),
        "w3": xavier(k3, hidden_dim, num_outputs),
        "b3": jnp.zeros((num_outputs,), jnp.float32),
    }


def _reference_forward(x, params, eps=1e-6):
    """Pure-JAX f32 reference matching the PyTorch module semantics."""
    h1 = x @ params["w1"] + params["b1"]
    mean = jnp.mean(h1, axis=-1, keepdims=True)
    std = jnp.std(h1, axis=-1, keepdims=True, ddof=1)     # torch.std (unbiased)
    h = (h1 - mean) / (std + eps) + params["ln_center"]
    h = jnp.maximum(h, 0.0)
    h2 = jnp.maximum(h @ params["w2"] + params["b2"], 0.0)
    return h2 @ params["w3"] + params["b3"]


# TODO(synk): crossEntropy / get_log_pi / update (Adam step, backward, grad clip)
# are training utilities with no forward-pass Pallas equivalent; not implemented.

if __name__ == "__main__":
    # Small, module-consistent shapes (batch deliberately not a multiple of 8
    # to exercise the padding path).
    batch = 12
    num_inputs = 16
    hidden_dim = 32
    num_outputs = 8

    key = jax.random.PRNGKey(0)
    kx, kp = jax.random.split(key)
    x = jax.random.normal(kx, (batch, num_inputs), jnp.float32)
    params = init_params(kp, num_inputs, hidden_dim, num_outputs)

    out = predict_action_forward(x, params)
    out = jax.block_until_ready(out)

    ref = _reference_forward(x, params)
    assert out.shape == (batch, num_outputs)
    max_err = float(jnp.max(jnp.abs(out - ref)))
    # bf16 MXU inputs (f32 accumulation) + approx reciprocal -> loosened tolerance.
    assert jnp.allclose(out, ref, atol=3e-2, rtol=3e-2), (
        f"mismatch vs reference, max |err|={max_err}")

    print("KERNEL_OK")
</pallas_src>

<mosaic_0001>
module attributes {stable_mosaic.version = 11 : i64} {
  func.func @_predict_kernel(%arg0: i32, %arg1: memref<16x16xbf16, #tpu.memory_space<vmem>>, %arg2: memref<16x32xbf16, #tpu.memory_space<vmem>>, %arg3: memref<1x32xf32, #tpu.memory_space<vmem>>, %arg4: memref<1x32xf32, #tpu.memory_space<vmem>>, %arg5: memref<32x32xbf16, #tpu.memory_space<vmem>>, %arg6: memref<1x32xf32, #tpu.memory_space<vmem>>, %arg7: memref<32x128xbf16, #tpu.memory_space<vmem>>, %arg8: memref<1x128xf32, #tpu.memory_space<vmem>>, %arg9: memref<16x128xf32, #tpu.memory_space<vmem>>) attributes {dimension_semantics = [#tpu.dimension_semantics<parallel>], iteration_bounds = array<i64: 1>, scalar_prefetch = 0 : i64, scratch_operands = 0 : i64, tpu.core_type = #tpu.core_type<tc>, window_params = [{transform_indices = @transform_0, window_bounds = array<i64: 16, 16>}, {pipeline_mode = #tpu.pipeline_mode<synchronous>, transform_indices = @transform_1, window_bounds = array<i64: 16, 32>}, {pipeline_mode = #tpu.pipeline_mode<synchronous>, transform_indices = @transform_2, window_bounds = array<i64: 1, 32>}, {pipeline_mode = #tpu.pipeline_mode<synchronous>, transform_indices = @transform_3, window_bounds = array<i64: 1, 32>}, {pipeline_mode = #tpu.pipeline_mode<synchronous>, transform_indices = @transform_4, window_bounds = array<i64: 32, 32>}, {pipeline_mode = #tpu.pipeline_mode<synchronous>, transform_indices = @transform_5, window_bounds = array<i64: 1, 32>}, {pipeline_mode = #tpu.pipeline_mode<synchronous>, transform_indices = @transform_6, window_bounds = array<i64: 32, 128>}, {pipeline_mode = #tpu.pipeline_mode<synchronous>, transform_indices = @transform_7, window_bounds = array<i64: 1, 128>}, {transform_indices = @transform_8, window_bounds = array<i64: 16, 128>}]} {
    %c0 = arith.constant 0 : index
    %c0_0 = arith.constant 0 : index
    %0 = vector.load %arg1[%c0, %c0_0] : memref<16x16xbf16, #tpu.memory_space<vmem>>, vector<16x16xbf16>
    %c0_1 = arith.constant 0 : index
    %c0_2 = arith.constant 0 : index
    %1 = vector.load %arg2[%c0_1, %c0_2] : memref<16x32xbf16, #tpu.memory_space<vmem>>, vector<16x32xbf16>
    %cst = arith.constant dense<0.000000e+00> : vector<16x32xf32>
    %2 = tpu.matmul %0, %1, %cst {dimension_numbers = #tpu.dot_dimension_numbers<[1], [0], [0], [1], [0, 0, 1, 1], [], []>} : vector<16x16xbf16>, vector<16x32xbf16>, vector<16x32xf32> -> vector<16x32xf32>
    %c0_3 = arith.constant 0 : index
    %c0_4 = arith.constant 0 : index
    %3 = vector.load %arg3[%c0_3, %c0_4] : memref<1x32xf32, #tpu.memory_space<vmem>>, vector<1x32xf32>
    %4 = vector.broadcast %3 : vector<1x32xf32> to vector<16x32xf32>
    %5 = arith.addf %2, %4 : vector<16x32xf32>
    %cst_5 = arith.constant dense<0.000000e+00> : vector<16xf32>
    %6 = vector.multi_reduction <add>, %5, %cst_5 [1] : vector<16x32xf32> to vector<16xf32>
    %7 = vector.shape_cast %6 : vector<16xf32> to vector<16x1xf32>
    %cst_6 = arith.constant 3.200000e+01 : f32
    %8 = vector.broadcast %cst_6 : f32 to vector<16x1xf32>
    %9 = arith.divf %7, %8 : vector<16x1xf32>
    %10 = vector.broadcast %9 : vector<16x1xf32> to vector<16x32xf32>
    %11 = arith.subf %5, %10 : vector<16x32xf32>
    %12 = arith.mulf %11, %11 : vector<16x32xf32>
    %cst_7 = arith.constant dense<0.000000e+00> : vector<16xf32>
    %13 = vector.multi_reduction <add>, %12, %cst_7 [1] : vector<16x32xf32> to vector<16xf32>
    %14 = vector.shape_cast %13 : vector<16xf32> to vector<16x1xf32>
    %cst_8 = arith.constant 0.0322580636 : f32
    %15 = vector.broadcast %cst_8 : f32 to vector<16x1xf32>
    %16 = arith.mulf %14, %15 : vector<16x1xf32>
    %17 = math.sqrt %16 : vector<16x1xf32>
    %cst_9 = arith.constant 9.99999997E-7 : f32
    %18 = vector.broadcast %cst_9 : f32 to vector<16x1xf32>
    %19 = arith.addf %17, %18 : vector<16x1xf32>
    %20 = tpu.reciprocal %19 {approx = true} : vector<16x1xf32> -> vector<16x1xf32>
    %21 = vector.broadcast %20 : vector<16x1xf32> to vector<16x32xf32>
    %22 = arith.mulf %11, %21 : vector<16x32xf32>
    %c0_10 = arith.constant 0 : index
    %c0_11 = arith.constant 0 : index
    %23 = vector.load %arg4[%c0_10, %c0_11] : memref<1x32xf32, #tpu.memory_space<vmem>>, vector<1x32xf32>
    %24 = vector.broadcast %23 : vector<1x32xf32> to vector<16x32xf32>
    %25 = arith.addf %22, %24 : vector<16x32xf32>
    %cst_12 = arith.constant 0.000000e+00 : f32
    %26 = vector.broadcast %cst_12 : f32 to vector<16x32xf32>
    %27 = arith.maximumf %25, %26 : vector<16x32xf32>
    %28 = arith.truncf %27 : vector<16x32xf32> to vector<16x32xbf16>
    %c0_13 = arith.constant 0 : index
    %c0_14 = arith.constant 0 : index
    %29 = vector.load %arg5[%c0_13, %c0_14] : memref<32x32xbf16, #tpu.memory_space<vmem>>, vector<32x32xbf16>
    %cst_15 = arith.constant dense<0.000000e+00> : vector<16x32xf32>
    %30 = tpu.matmul %28, %29, %cst_15 {dimension_numbers = #tpu.dot_dimension_numbers<[1], [0], [0], [1], [0, 0, 1, 1], [], []>} : vector<16x32xbf16>, vector<32x32xbf16>, vector<16x32xf32> -> vector<16x32xf32>
    %c0_16 = arith.constant 0 : index
    %c0_17 = arith.constant 0 : index
    %31 = vector.load %arg6[%c0_16, %c0_17] : memref<1x32xf32, #tpu.memory_space<vmem>>, vector<1x32xf32>
    %32 = vector.broadcast %31 : vector<1x32xf32> to vector<16x32xf32>
    %33 = arith.addf %30, %32 : vector<16x32xf32>
    %cst_18 = arith.constant 0.000000e+00 : f32
    %34 = vector.broadcast %cst_18 : f32 to vector<16x32xf32>
    %35 = arith.maximumf %33, %34 : vector<16x32xf32>
    %36 = arith.truncf %35 : vector<16x32xf32> to vector<16x32xbf16>
    %c0_19 = arith.constant 0 : index
    %c0_20 = arith.constant 0 : index
    %37 = vector.load %arg7[%c0_19, %c0_20] : memref<32x128xbf16, #tpu.memory_space<vmem>>, vector<32x128xbf16>
    %cst_21 = arith.constant dense<0.000000e+00> : vector<16x128xf32>
    %38 = tpu.matmul %36, %37, %cst_21 {dimension_numbers = #tpu.dot_dimension_numbers<[1], [0], [0], [1], [0, 0, 1, 1], [], []>} : vector<16x32xbf16>, vector<32x128xbf16>, vector<16x128xf32> -> vector<16x128xf32>
    %c0_22 = arith.constant 0 : index
    %c0_23 = arith.constant 0 : index
    %39 = vector.load %arg8[%c0_22, %c0_23] : memref<1x128xf32, #tpu.memory_space<vmem>>, vector<1x128xf32>
    %40 = vector.broadcast %39 : vector<1x128xf32> to vector<16x128xf32>
    %41 = arith.addf %38, %40 : vector<16x128xf32>
    %c0_24 = arith.constant 0 : index
    %c0_25 = arith.constant 0 : index
    %42 = vector.load %arg9[%c0_24, %c0_25] : memref<16x128xf32, #tpu.memory_space<vmem>>, vector<16x128xf32>
    tpu.vector_store %arg9[%c0_24, %c0_25], %41 {strides = array<i32>} : memref<16x128xf32, #tpu.memory_space<vmem>>, vector<16x128xf32>,
    return
  }
  func.func @transform_0(%arg0: i32) -> (i32, i32) {
    %c0_i32 = arith.constant 0 : i32
    %c0_i32_0 = arith.constant 0 : i32
    return %arg0, %c0_i32 : i32, i32
  }
  func.func @transform_1(%arg0: i32) -> (i32, i32) {
    %c0_i32 = arith.constant 0 : i32
    %c0_i32_0 = arith.constant 0 : i32
    %c0_i32_1 = arith.constant 0 : i32
    return %c0_i32, %c0_i32_0 : i32, i32
  }
  func.func @transform_2(%arg0: i32) -> (i32, i32) {
    %c0_i32 = arith.constant 0 : i32
    %c0_i32_0 = arith.constant 0 : i32
    %c0_i32_1 = arith.constant 0 : i32
    return %c0_i32, %c0_i32_0 : i32, i32
  }
  func.func @transform_3(%arg0: i32) -> (i32, i32) {
    %c0_i32 = arith.constant 0 : i32
    %c0_i32_0 = arith.constant 0 : i32
    %c0_i32_1 = arith.constant 0 : i32
    return %c0_i32, %c0_i32_0 : i32, i32
  }
  func.func @transform_4(%arg0: i32) -> (i32, i32) {
    %c0_i32 = arith.constant 0 : i32
    %c0_i32_0 = arith.constant 0 : i32
    %c0_i32_1 = arith.constant 0 : i32
    return %c0_i32, %c0_i32_0 : i32, i32
  }
  func.func @transform_5(%arg0: i32) -> (i32, i32) {
    %c0_i32 = arith.constant 0 : i32
    %c0_i32_0 = arith.constant 0 : i32
    %c0_i32_1 = arith.constant 0 : i32
    return %c0_i32, %c0_i32_0 : i32, i32
  }
  func.func @transform_6(%arg0: i32) -> (i32, i32) {
    %c0_i32 = arith.constant 0 : i32
    %c0_i32_0 = arith.constant 0 : i32
    %c0_i32_1 = arith.constant 0 : i32
    return %c0_i32, %c0_i32_0 : i32, i32
  }
  func.func @transform_7(%arg0: i32) -> (i32, i32) {
    %c0_i32 = arith.constant 0 : i32
    %c0_i32_0 = arith.constant 0 : i32
    %c0_i32_1 = arith.constant 0 : i32
    return %c0_i32, %c0_i32_0 : i32, i32
  }
  func.func @transform_8(%arg0: i32) -> (i32, i32) {
    %c0_i32 = arith.constant 0 : i32
    %c0_i32_0 = arith.constant 0 : i32
    return %arg0, %c0_i32 : i32, i32
  }
}

</mosaic_0001>

<bundles_post_ra>
// kernel: tpu_custom_call.1
= control target key start
LH: loop header
LB: loop body
LE: loop exit
PB: predicated region body
PF: predicated region fallthrough
CT: control target
= control target key end

     0   :  { %13 = vsyncpa [#allocation3], 0  ;;  %s571_s0 = inlined_call_operand.hbm [shape: bf16[16,16], index: 0, kind: input, shape index: {}]   ;;  %s572_s1 = inlined_call_operand.hbm [shape: bf16[16,32], index: 1, kind: input, shape index: {}]   ;;  %s573_s2 = inlined_call_operand.vmem [shape: f32[1,32], index: 2, kind: input, shape index: {}]   ;;  %s574_s3 = inlined_call_operand.vmem [shape: f32[1,32], index: 3, kind: input, shape index: {}]   ;;  %s575_s4 = inlined_call_operand.hbm [shape: bf16[32,32], index: 4, kind: input, shape index: {}]   ;;  %s576_s5 = inlined_call_operand.vmem [shape: f32[1,32], index: 5, kind: input, shape index: {}]   ;;  %s577_s6 = inlined_call_operand.hbm [shape: bf16[32,128], index: 6, kind: input, shape index: {}]   ;;  %s578_s7 = inlined_call_operand.vmem [shape: f32[1,128], index: 7, kind: input, shape index: {}]   ;;  %s579_s8 = inlined_call_operand.hbm [shape: f32[16,128], index: 8, kind: output, shape index: {}]  }
   0x1   :  { %14 = vsyncpa [#allocation6], 0 }
   0x2   :  { %15 = vsyncpa [#allocation9], 0 }
   0x3   :  { %16 = vsyncpa [#allocation4], 0  ;;  %s34_s29 = sshll.u32 %s572_s1, 4  ;;  %s483_s30 = smov [#allocation5]   ;;  %s35_s29 = int_to_ptr.hbm [resolvable:$true] %s34_s29 }
   0x4   :  { %s36_s9 = sshll.u32 %s483_s30, 4  ;;  %s21_s12 = sshll.u32 %s571_s0, 4  ;;  %s37_s9 = int_to_ptr.vmem [resolvable:$true] %s36_s9  ;;  %s22_s12 = int_to_ptr.hbm [resolvable:$true] %s21_s12 }
   0x5   :  { %s484_s13 = smov 64   ;;  %s485_s14 = smov 4  }
   0x6   :  { %42 = dma.hbm_to_vmem [thread:$0]  %s35_s29, 128, %s37_s9, [#allocation6], %s484_s13, %s484_s13, %s485_s14  }
   0x7   :  { %s486_s15 = smov [#allocation2]   ;;  %s51_s19 = sshll.u32 %s575_s4, 4  ;;  %s52_s19 = int_to_ptr.hbm [resolvable:$true] %s51_s19 }
   0x8   :  { %s23_s16 = sshll.u32 %s486_s15, 4  ;;  %s66_s21 = sshll.u32 %s577_s6, 4  ;;  %s24_s16 = int_to_ptr.vmem [resolvable:$true] %s23_s16  ;;  %s67_s21 = int_to_ptr.hbm [resolvable:$true] %s66_s21 }
   0x9   :  { %29 = dma.hbm_to_vmem [thread:$0]  %s22_s12, 128, %s24_s16, [#allocation3], %s484_s13, %s484_s13, %s485_s14  }
   0xa   :  { %s487_s22 = smov [#allocation7]   ;;  %s488_s0 = smov [#allocation8]  }
   0xb   :  { %s53_s23 = sshll.u32 %s487_s22, 4  ;;  %s68_s24 = sshll.u32 %s488_s0, 4  ;;  %s54_s23 = int_to_ptr.vmem [resolvable:$true] %s53_s23  ;;  %s69_s24 = int_to_ptr.vmem [resolvable:$true] %s68_s24 }
   0xc   :  { %59 = dma.hbm_to_vmem [thread:$0]  %s52_s19, 256, %s54_s23, [#allocation6], %s484_s13, %s484_s13, %s485_s14  }
   0xd   :  { %74 = dma.hbm_to_vmem [thread:$0]  %s67_s21, 256, %s69_s24, [#allocation9], %s484_s13, %s484_s13, %s485_s14  }
   0xe   :  { %475 = dma.done.wait [#allocation3], 128  }
   0xf   :  { %476 = vsyncadd [#allocation3], 4294967168 }
  0x10   :  { %477 = dma.done.wait [#allocation6], 384  }
  0x11   :  { %478 = vsyncadd [#allocation6], 4294966912 }
  0x12   :  { %479 = dma.done.wait [#allocation9], 256  }
  0x13   :  { %480 = vsyncadd [#allocation9], 4294967040  ;;  %v326_v0 = vld [vmem:[#allocation5] sm:$0xff]  ;;  %v325_v1 = vld [vmem:[#allocation2] sm:$0xff]  ;;  %vm113_vm0 = vcmask 130048   ;;  %vm131_vm1 = vcmask 261120  }
  0x14   :  { %124 = vmatpush.bf16.msra.mxu0 %v326_v0  ;;  %v341_v2 = vld [vmem:[%s573_s2] ss:$0 sm:$0xff]  ;;  %v489_v9 = vmov 32.0   ;;  %v328_v26 = vld [vmem:[#allocation7 + $0x8] sm:$0xff]  ;;  %v327_v27 = vld [vmem:[#allocation7] sm:$0xff]  ;;  %s490_s29 = smov [#allocation10]  }
  0x15   :  { %345 = vrcp.f32 %v489_v9  ;;  %227 = vmatpush.bf16.msra.mxu1 %v328_v26  ;;  %v342_v56 = vld [vmem:[%s574_s3] ss:$0 sm:$0xff]  ;;  %v330_v0 = vld [vmem:[#allocation8 + $0x8] sm:$0xff]  ;;  %s281_s30 = sshll.u32 %s490_s29, 4  ;;  %s491_s11 = smov 128   ;;  %s282_s30 = int_to_ptr.vmem [resolvable:$true] %s281_s30 }
  0x16   :  { %267 = vmatpush.bf16.msra.mxu2 %v330_v0  ;;  %s492_s12 = smov 8  }
  0x17   :  { %306 = vmatmul.msk.bf16.vlgmr.msra.gmra.mxu0 %vm113_vm0, %v325_v1  ;;  %v329_v1 = vld [vmem:[#allocation8] sm:$0xff] }
  0x19   :  { %228 = vmatpush.bf16.msra.mxu1 %v327_v27 }
  0x1a   :  { %268 = vmatpush.bf16.msra.mxu2 %v329_v1 }
  0x1b   :  { %v346_v10 = vpop.eup %345 }
  0x1c   :  { %v139_v11 = vmul.f32 32.0, %v346_v10  ;;  %vm143_vm2 = vweird.f32 %v346_v10 }
  0x1e   :  { %v140_v12 = vsub.f32 1.0, %v139_v11 }
  0x20   :  { %v141_v13 = vmul.f32 %v346_v10, %v140_v12 }
  0x22   :  { %v142_v14 = vadd.f32 %v346_v10, %v141_v13 }
  0x24   :  { %v144_v15 = vsel %vm143_vm2, %v346_v10, %v142_v14  ;;  %v344_v10 = vld [vmem:[%s578_s7] ss:$0 sm:$0xff] }
  0x94   :  { %v126_v3 = vpop.f32.mrf.mxu0 }
  0x95   :  { %v127_v4 = vadd.f32 %v341_v2, %v126_v3  ;;  %v343_v3 = vld [vmem:[%s576_s5] ss:$0 sm:$0xff]  ;;  %s283_s5 = sshll.u32 %s579_s8, 4  ;;  %s284_s5 = int_to_ptr.hbm [resolvable:$true] %s283_s5 }
  0x97   :  { %v132_v5 = vsel %vm131_vm1, %v127_v4, 0.0 }
  0x98   :  { %133 = vadd.xlane.f32.xlu0 %v132_v5 }
  0x9c   :  { %v128_v6 = vpop.f32.mrf.mxu0 }
  0x9d   :  { %v129_v7 = vadd.f32 %v341_v2, %v128_v6 }
  0x9f   :  { %v135_v8 = vsel %vm131_vm1, %v129_v7, 0.0 }
  0xa0   :  { %136 = vadd.xlane.f32.xlu0 %v135_v8 }
 0x10b   :  { %v134_v16 = vpop.xlane.xlu0 %133 }
 0x10c   :  { %v145_v17 = vmul.f32 %v144_v15, %v134_v16 }
 0x10e   :  { %v147_v18 = vsub.f32 %v127_v4, %v145_v17 }
 0x110   :  { %v149_v19 = vmul.f32 %v147_v18, %v147_v18 }
 0x112   :  { %v151_v20 = vsel %vm131_vm1, %v149_v19, 0.0 }
 0x113   :  { %152 = vadd.xlane.f32.xlu1 %v151_v20  ;;  %v137_v21 = vpop.xlane.xlu0 %136 }
 0x114   :  { %v146_v22 = vmul.f32 %v144_v15, %v137_v21 }
 0x116   :  { %v148_v23 = vsub.f32 %v129_v7, %v146_v22 }
 0x118   :  { %v150_v24 = vmul.f32 %v148_v23, %v148_v23 }
 0x11a   :  { %v154_v25 = vsel %vm131_vm1, %v150_v24, 0.0 }
 0x11b   :  { %155 = vadd.xlane.f32.xlu1 %v154_v25 }
 0x186   :  { %v153_v28 = vpop.xlane.xlu1 %152 }
 0x187   :  { %v157_v29 = vmul.f32 0.032258064, %v153_v28 }
 0x189   :  { %347 = vrsqrt.f32 %v157_v29  ;;  %vm166_vm3 = vcmp.eq.f32.partialorder %v157_v29, inf  ;;  %v169_v42 = vand.u32 2147483648, %v157_v29  ;;  %vm168_vm4 = vcmp.eq.f32.partialorder %v157_v29, 0.0 }
 0x18e   :  { %v156_v30 = vpop.xlane.xlu1 %155 }
 0x18f   :  { %v348_v31 = vpop.eup %347  ;;  %v158_v32 = vmul.f32 0.032258064, %v156_v30 }
 0x190   :  { %v160_v33 = vmul.f32 %v348_v31, %v157_v29 }
 0x191   :  { %349 = vrsqrt.f32 %v158_v32  ;;  %vm178_vm5 = vcmp.eq.f32.partialorder %v158_v32, inf  ;;  %v181_v50 = vand.u32 2147483648, %v158_v32  ;;  %vm180_vm6 = vcmp.eq.f32.partialorder %v158_v32, 0.0 }
 0x192   :  { %v161_v34 = vmul.f32 %v348_v31, %v160_v33 }
 0x194   :  { %v162_v35 = vmul.f32 0.5, %v161_v34 }
 0x196   :  { %v163_v36 = vsub.f32 1.5, %v162_v35 }
 0x197   :  { %v350_v37 = vpop.eup %349 }
 0x198   :  { %v172_v38 = vmul.f32 %v350_v37, %v158_v32  ;;  %v164_v39 = vmul.f32 %v348_v31, %v163_v36 }
 0x19a   :  { %v173_v40 = vmul.f32 %v350_v37, %v172_v38  ;;  %v165_v41 = vmul.f32 %v164_v39, %v157_v29 }
 0x19c   :  { %v174_v43 = vmul.f32 0.5, %v173_v40  ;;  %v167_v44 = vsel %vm166_vm3, %v157_v29, %v165_v41 }
 0x19d   :  { %v170_v45 = vsel %vm168_vm4, %v169_v42, %v167_v44 }
 0x19e   :  { %v175_v46 = vsub.f32 1.5, %v174_v43  ;;  %v183_v47 = vadd.f32 1e-06, %v170_v45 }
 0x1a0   :  { %v176_v48 = vmul.f32 %v350_v37, %v175_v46  ;;  %351 = vrcp.f32 %v183_v47 }
 0x1a2   :  { %v177_v49 = vmul.f32 %v176_v48, %v158_v32 }
 0x1a4   :  { %v179_v51 = vsel %vm178_vm5, %v158_v32, %v177_v49 }
 0x1a5   :  { %v182_v52 = vsel %vm180_vm6, %v181_v50, %v179_v51 }
 0x1a6   :  { %v184_v53 = vadd.f32 1e-06, %v182_v52  ;;  %v352_v54 = vpop.eup %351 }
 0x1a7   :  { %v187_v55 = vmul.f32 %v352_v54, %v147_v18 }
 0x1a8   :  { %353 = vrcp.f32 %v184_v53 }
 0x1a9   :  { %v193_v59 = vadd.f32 %v342_v56, %v187_v55 }
 0x1ab   :  { %v195_v61 = vmax.f32 %v193_v59, 0.0 }
 0x1ae   :  { %v354_v57 = vpop.eup %353 }
 0x1af   :  { %v188_v58 = vmul.f32 %v354_v57, %v148_v23 }
 0x1b1   :  { %v194_v60 = vadd.f32 %v342_v56, %v188_v58 }
 0x1b3   :  { %v196_v62 = vmax.f32 %v194_v60, 0.0 }
 0x1b5   :  { %v197_v63 = vpack.c.bf16 %v196_v62, %v195_v61 }
 0x1b7   :  { %315 = vmatmul.msk.bf16.vlgmr.msra.gmra.mxu1 %vm131_vm1, %v197_v63 }
 0x234   :  { %v230_v2 = vpop.f32.mrf.mxu1 }
 0x235   :  { %v231_v4 = vadd.f32 %v343_v3, %v230_v2 }
 0x237   :  { %v235_v7 = vmax.f32 %v231_v4, 0.0 }
 0x23c   :  { %v232_v5 = vpop.f32.mrf.mxu1 }
 0x23d   :  { %v233_v6 = vadd.f32 %v343_v3, %v232_v5 }
 0x23f   :  { %v236_v8 = vmax.f32 %v233_v6, 0.0 }
 0x241   :  { %v237_v9 = vpack.c.bf16 %v236_v8, %v235_v7 }
 0x243   :  { %324 = vmatmul.msk.bf16.vlgmr.msra.gmra.mxu2 %vm131_vm1, %v237_v9 }
 0x2c6   :  { %v270_v11 = vpop.f32.mrf.mxu2 }
 0x2c7   :  { %v271_v12 = vadd.f32 %v344_v10, %v270_v11 }
 0x2c9   :  { %275 = vst [vmem:[#allocation10] sm:$0xff] %v271_v12 }
 0x2ce   :  { %v272_v13 = vpop.f32.mrf.mxu2 }
 0x2cf   :  { %v273_v14 = vadd.f32 %v344_v10, %v272_v13 }
 0x2d1   :  { %276 = vst [vmem:[#allocation10 + $0x8] sm:$0xff] %v273_v14 }
 0x2d2   :  { %289 = dma.vmem_to_hbm [thread:$0]  %s282_s30, 256, %s284_s5, [#allocation4], %s491_s11, %s491_s11, %s492_s12  }
 0x2d3   :  { %481 = dma.done.wait [#allocation4], 256  }
 0x2d4   :  { %482 = vsyncadd [#allocation4], 4294967040 }
 0x2d5   :  { %294 = vsyncpa [#allocation3], 1 }
 0x2d6   :  { %295 = vsyncpa [#allocation6], 1 }
 0x2d7   :  { %296 = vsyncpa [#allocation9], 1 }
 0x2d8   :  { %297 = vsyncpa [#allocation4], 1 }

</bundles_post_ra>
